<compile_context>
chip_gen: v7x
topology: tpu7x:2x2x1
jax: 0.10.0
libtpu: 0.0.40
codegen_flags: <defaults>
</compile_context>

<pallas_src>
import functools
import math

import jax
import jax.numpy as jnp
from jax.experimental import pallas as pl
from jax.experimental.pallas import tpu as pltpu


def _round_up(x, m):
    return (x + m - 1) // m * m


def _cdiv(a, b):
    return (a + b - 1) // b


@functools.lru_cache(maxsize=1)
def _num_tensorcores():
    """TensorCores per device (2 on v7x, 1 on v5e/v6e). Conservative fallback of 1 so
    single-TC chips never pay for parallelism they do not have."""
    try:
        n = getattr(jax.devices()[0], "num_cores", None)
        if n:
            return int(n)
    except Exception:
        pass
    return 1


def mlp_kernel(x_ref, w1_ref, b1_ref, w2_ref, b2_ref, w3_ref, b3_ref,
               w4_ref, b4_ref, o_ref):
    # In-kernel f32 -> bf16 cast of the activations (VPU, hidden under the MXU).
    x = x_ref[...].astype(jnp.bfloat16)
    # Four MXU matmuls with bf16 operands and f32 accumulation; bias adds in f32.
    h = jnp.dot(x, w1_ref[...], preferred_element_type=jnp.float32) + b1_ref[...]
    h = jnp.dot(h.astype(jnp.bfloat16), w2_ref[...],
                preferred_element_type=jnp.float32) + b2_ref[...]
    h = jnp.dot(h.astype(jnp.bfloat16), w3_ref[...],
                preferred_element_type=jnp.float32) + b3_ref[...]
    h = jnp.dot(h.astype(jnp.bfloat16), w4_ref[...],
                preferred_element_type=jnp.float32) + b4_ref[...]
    # Sigmoid epilogue: exp on the EUP, approx reciprocal also on the EUP; store bf16.
    o_ref[...] = pl.reciprocal(1.0 + jnp.exp(-h), approx=True).astype(o_ref.dtype)


def _choose_tm(batch, tm_default, num_tc):
    """Batch tile: as big as tm_default allows (amortizes the ~0.35us per-grid-step
    overhead and streams a long LHS through the MXU), multiple of 16 (bf16 output
    sublane pairs), never larger than the batch (the ragged last grid step is masked
    by Pallas). Split across TensorCores only on chips that have more than one."""
    if batch < 16:
        return batch  # one full-batch tile; a full-dim block is always legal
    tm = min(tm_default, (batch // 16) * 16)
    if num_tc > 1:
        per_core = _round_up(_cdiv(batch, num_tc), 16)
        tm = max(16, min(tm, per_core))
    return tm


@functools.partial(jax.jit, static_argnames=("out_dim", "tm"))
def _mlp_forward_impl(x, params, *, out_dim, tm):
    w1, b1, w2, b2, w3, b3, w4, b4 = (
        params["w1"], params["b1"], params["w2"], params["b2"],
        params["w3"], params["b3"], params["w4"], params["b4"],
    )
    B, din = x.shape
    dout_p = w4.shape[1]
    grid = (_cdiv(B, tm),)   # ragged last tile handled by Pallas masking

    def xmap(i):
        return (i, 0)

    def const_map(i):
        # constant block index -> weights/biases stay VMEM-resident, no re-DMA per step
        return (0, 0)

    out = pl.pallas_call(
        mlp_kernel,
        out_shape=jax.ShapeDtypeStruct((B, dout_p), jnp.bfloat16),
        grid_spec=pltpu.PrefetchScalarGridSpec(
            num_scalar_prefetch=0,
            grid=grid,
            in_specs=[
                pl.BlockSpec((tm, din), xmap),       # x: native f32, full feature dim
                pl.BlockSpec(w1.shape, const_map),
                pl.BlockSpec(b1.shape, const_map),
                pl.BlockSpec(w2.shape, const_map),
                pl.BlockSpec(b2.shape, const_map),
                pl.BlockSpec(w3.shape, const_map),
                pl.BlockSpec(b3.shape, const_map),
                pl.BlockSpec(w4.shape, const_map),
                pl.BlockSpec(b4.shape, const_map),
            ],
            out_specs=pl.BlockSpec((tm, dout_p), xmap),
        ),
        compiler_params=pltpu.CompilerParams(
            dimension_semantics=("parallel",)),
    )(x, w1, b1, w2, b2, w3, b3, w4, b4)

    return out[:, :out_dim]


def mlp_forward(x, params, *, out_dim, tm_default=1024):
    """x: (B, input_dim) float32. Returns (B, out_dim) bfloat16 sigmoid activations.
    tm_default is the batch-tile upper bound; sweep {512, 1024, 2048} for large B."""
    tm = _choose_tm(x.shape[0], tm_default, _num_tensorcores())
    return _mlp_forward_impl(x, params, out_dim=out_dim, tm=tm)


def init_params(key, input_dim, output_dim):
    """PyTorch-style nn.Linear init (U[-1/sqrt(fan_in), +1/sqrt(fan_in)]), stored
    transposed (in, out). fan_out is zero-padded to x128 (lane alignment); fan_in of
    layer 1 stays at the native input_dim (x is consumed unpadded), deeper layers'
    fan_in equals the previous layer's padded fan_out. Weights bf16 (MXU operands),
    biases f32 (VPU epilogue)."""
    dims = [input_dim, 500, 250, 125, output_dim]
    params = {}
    keys = jax.random.split(key, 8)
    for layer in range(4):
        fan_in, fan_out = dims[layer], dims[layer + 1]
        fout_p = _round_up(fan_out, 128)
        fin_p = fan_in if layer == 0 else _round_up(fan_in, 128)
        bound = 1.0 / math.sqrt(fan_in)
        w = jax.random.uniform(keys[2 * layer], (fan_in, fan_out),
                               jnp.float32, -bound, bound)
        b = jax.random.uniform(keys[2 * layer + 1], (fan_out,),
                               jnp.float32, -bound, bound)
        w_p = jnp.zeros((fin_p, fout_p), jnp.float32).at[:fan_in, :fan_out].set(w)
        b_p = jnp.zeros((1, fout_p), jnp.float32).at[0, :fan_out].set(b)
        params[f"w{layer + 1}"] = w_p.astype(jnp.bfloat16)
        params[f"b{layer + 1}"] = b_p
    return params


def mlp_reference(x, params):
    """Pure-JAX reference of the same bf16-operand / f32-accumulate math (exact sigmoid)."""
    h_bf16 = x.astype(jnp.bfloat16)
    h32 = None
    for layer in range(4):
        h32 = jnp.dot(h_bf16, params[f"w{layer + 1}"],
                      preferred_element_type=jnp.float32) + params[f"b{layer + 1}"]
        h_bf16 = h32.astype(jnp.bfloat16)
    return jax.nn.sigmoid(h32)


if __name__ == "__main__":
    input_dim, output_dim = 64, 10
    batch = 8

    key = jax.random.PRNGKey(0)
    kparam, kx = jax.random.split(key)
    params = init_params(kparam, input_dim, output_dim)
    x = jax.random.normal(kx, (batch, input_dim), jnp.float32)

    out = mlp_forward(x, params, out_dim=output_dim)
    out = jax.block_until_ready(out)

    ref = mlp_reference(x, params)[:, :output_dim]
    assert out.shape == (batch, output_dim)
    # kernel uses the approx (EUP) reciprocal and a bf16 output store, hence 1e-2 tolerance
    assert jnp.allclose(out.astype(jnp.float32), ref, atol=1e-2, rtol=1e-2), \
        "mismatch vs reference"

    print("KERNEL_OK")
</pallas_src>

<mosaic_0001>
module attributes {stable_mosaic.version = 11 : i64} {
  func.func @mlp_kernel(%arg0: i32, %arg1: memref<8x64xf32, #tpu.memory_space<vmem>>, %arg2: memref<64x512xbf16, #tpu.memory_space<vmem>>, %arg3: memref<1x512xf32, #tpu.memory_space<vmem>>, %arg4: memref<512x256xbf16, #tpu.memory_space<vmem>>, %arg5: memref<1x256xf32, #tpu.memory_space<vmem>>, %arg6: memref<256x128xbf16, #tpu.memory_space<vmem>>, %arg7: memref<1x128xf32, #tpu.memory_space<vmem>>, %arg8: memref<128x128xbf16, #tpu.memory_space<vmem>>, %arg9: memref<1x128xf32, #tpu.memory_space<vmem>>, %arg10: memref<8x128xbf16, #tpu.memory_space<vmem>>) attributes {dimension_semantics = [#tpu.dimension_semantics<parallel>], iteration_bounds = array<i64: 1>, scalar_prefetch = 0 : i64, scratch_operands = 0 : i64, tpu.core_type = #tpu.core_type<tc>, window_params = [{transform_indices = @transform_0, window_bounds = array<i64: 8, 64>}, {pipeline_mode = #tpu.pipeline_mode<synchronous>, transform_indices = @transform_1, window_bounds = array<i64: 64, 512>}, {pipeline_mode = #tpu.pipeline_mode<synchronous>, transform_indices = @transform_2, window_bounds = array<i64: 1, 512>}, {pipeline_mode = #tpu.pipeline_mode<synchronous>, transform_indices = @transform_3, window_bounds = array<i64: 512, 256>}, {pipeline_mode = #tpu.pipeline_mode<synchronous>, transform_indices = @transform_4, window_bounds = array<i64: 1, 256>}, {pipeline_mode = #tpu.pipeline_mode<synchronous>, transform_indices = @transform_5, window_bounds = array<i64: 256, 128>}, {pipeline_mode = #tpu.pipeline_mode<synchronous>, transform_indices = @transform_6, window_bounds = array<i64: 1, 128>}, {pipeline_mode = #tpu.pipeline_mode<synchronous>, transform_indices = @transform_7, window_bounds = array<i64: 128, 128>}, {pipeline_mode = #tpu.pipeline_mode<synchronous>, transform_indices = @transform_8, window_bounds = array<i64: 1, 128>}, {transform_indices = @transform_9, window_bounds = array<i64: 8, 128>}]} {
    %c0 = arith.constant 0 : index
    %c0_0 = arith.constant 0 : index
    %0 = vector.load %arg1[%c0, %c0_0] : memref<8x64xf32, #tpu.memory_space<vmem>>, vector<8x64xf32>
    %1 = arith.truncf %0 : vector<8x64xf32> to vector<8x64xbf16>
    %c0_1 = arith.constant 0 : index
    %c0_2 = arith.constant 0 : index
    %2 = vector.load %arg2[%c0_1, %c0_2] : memref<64x512xbf16, #tpu.memory_space<vmem>>, vector<64x512xbf16>
    %cst = arith.constant dense<0.000000e+00> : vector<8x512xf32>
    %3 = tpu.matmul %1, %2, %cst {dimension_numbers = #tpu.dot_dimension_numbers<[1], [0], [0], [1], [0, 0, 1, 1], [], []>} : vector<8x64xbf16>, vector<64x512xbf16>, vector<8x512xf32> -> vector<8x512xf32>
    %c0_3 = arith.constant 0 : index
    %c0_4 = arith.constant 0 : index
    %4 = vector.load %arg3[%c0_3, %c0_4] : memref<1x512xf32, #tpu.memory_space<vmem>>, vector<1x512xf32>
    %5 = vector.broadcast %4 : vector<1x512xf32> to vector<8x512xf32>
    %6 = arith.addf %3, %5 : vector<8x512xf32>
    %7 = arith.truncf %6 : vector<8x512xf32> to vector<8x512xbf16>
    %c0_5 = arith.constant 0 : index
    %c0_6 = arith.constant 0 : index
    %8 = vector.load %arg4[%c0_5, %c0_6] : memref<512x256xbf16, #tpu.memory_space<vmem>>, vector<512x256xbf16>
    %cst_7 = arith.constant dense<0.000000e+00> : vector<8x256xf32>
    %9 = tpu.matmul %7, %8, %cst_7 {dimension_numbers = #tpu.dot_dimension_numbers<[1], [0], [0], [1], [0, 0, 1, 1], [], []>} : vector<8x512xbf16>, vector<512x256xbf16>, vector<8x256xf32> -> vector<8x256xf32>
    %c0_8 = arith.constant 0 : index
    %c0_9 = arith.constant 0 : index
    %10 = vector.load %arg5[%c0_8, %c0_9] : memref<1x256xf32, #tpu.memory_space<vmem>>, vector<1x256xf32>
    %11 = vector.broadcast %10 : vector<1x256xf32> to vector<8x256xf32>
    %12 = arith.addf %9, %11 : vector<8x256xf32>
    %13 = arith.truncf %12 : vector<8x256xf32> to vector<8x256xbf16>
    %c0_10 = arith.constant 0 : index
    %c0_11 = arith.constant 0 : index
    %14 = vector.load %arg6[%c0_10, %c0_11] : memref<256x128xbf16, #tpu.memory_space<vmem>>, vector<256x128xbf16>
    %cst_12 = arith.constant dense<0.000000e+00> : vector<8x128xf32>
    %15 = tpu.matmul %13, %14, %cst_12 {dimension_numbers = #tpu.dot_dimension_numbers<[1], [0], [0], [1], [0, 0, 1, 1], [], []>} : vector<8x256xbf16>, vector<256x128xbf16>, vector<8x128xf32> -> vector<8x128xf32>
    %c0_13 = arith.constant 0 : index
    %c0_14 = arith.constant 0 : index
    %16 = vector.load %arg7[%c0_13, %c0_14] : memref<1x128xf32, #tpu.memory_space<vmem>>, vector<1x128xf32>
    %17 = vector.broadcast %16 : vector<1x128xf32> to vector<8x128xf32>
    %18 = arith.addf %15, %17 : vector<8x128xf32>
    %19 = arith.truncf %18 : vector<8x128xf32> to vector<8x128xbf16>
    %c0_15 = arith.constant 0 : index
    %c0_16 = arith.constant 0 : index
    %20 = vector.load %arg8[%c0_15, %c0_16] : memref<128x128xbf16, #tpu.memory_space<vmem>>, vector<128x128xbf16>
    %cst_17 = arith.constant dense<0.000000e+00> : vector<8x128xf32>
    %21 = tpu.matmul %19, %20, %cst_17 {dimension_numbers = #tpu.dot_dimension_numbers<[1], [0], [0], [1], [0, 0, 1, 1], [], []>} : vector<8x128xbf16>, vector<128x128xbf16>, vector<8x128xf32> -> vector<8x128xf32>
    %c0_18 = arith.constant 0 : index
    %c0_19 = arith.constant 0 : index
    %22 = vector.load %arg9[%c0_18, %c0_19] : memref<1x128xf32, #tpu.memory_space<vmem>>, vector<1x128xf32>
    %23 = vector.broadcast %22 : vector<1x128xf32> to vector<8x128xf32>
    %24 = arith.addf %21, %23 : vector<8x128xf32>
    %cst_20 = arith.constant 0.000000e+00 : f32
    %25 = vector.broadcast %cst_20 : f32 to vector<8x128xf32>
    %26 = arith.subf %25, %24 : vector<8x128xf32>
    %27 = math.exp %26 : vector<8x128xf32>
    %cst_21 = arith.constant 1.000000e+00 : f32
    %28 = vector.broadcast %cst_21 : f32 to vector<8x128xf32>
    %29 = arith.addf %28, %27 : vector<8x128xf32>
    %30 = tpu.reciprocal %29 {approx = true} : vector<8x128xf32> -> vector<8x128xf32>
    %31 = arith.truncf %30 : vector<8x128xf32> to vector<8x128xbf16>
    %c0_22 = arith.constant 0 : index
    %c0_23 = arith.constant 0 : index
    %32 = vector.load %arg10[%c0_22, %c0_23] : memref<8x128xbf16, #tpu.memory_space<vmem>>, vector<8x128xbf16>
    tpu.vector_store %arg10[%c0_22, %c0_23], %31 {strides = array<i32>} : memref<8x128xbf16, #tpu.memory_space<vmem>>, vector<8x128xbf16>,
    return
  }
  func.func @transform_0(%arg0: i32) -> (i32, i32) {
    %c0_i32 = arith.constant 0 : i32
    %c0_i32_0 = arith.constant 0 : i32
    return %arg0, %c0_i32 : i32, i32
  }
  func.func @transform_1(%arg0: i32) -> (i32, i32) {
    %c0_i32 = arith.constant 0 : i32
    %c0_i32_0 = arith.constant 0 : i32
    %c0_i32_1 = arith.constant 0 : i32
    return %c0_i32, %c0_i32_0 : i32, i32
  }
  func.func @transform_2(%arg0: i32) -> (i32, i32) {
    %c0_i32 = arith.constant 0 : i32
    %c0_i32_0 = arith.constant 0 : i32
    %c0_i32_1 = arith.constant 0 : i32
    return %c0_i32, %c0_i32_0 : i32, i32
  }
  func.func @transform_3(%arg0: i32) -> (i32, i32) {
    %c0_i32 = arith.constant 0 : i32
    %c0_i32_0 = arith.constant 0 : i32
    %c0_i32_1 = arith.constant 0 : i32
    return %c0_i32, %c0_i32_0 : i32, i32
  }
  func.func @transform_4(%arg0: i32) -> (i32, i32) {
    %c0_i32 = arith.constant 0 : i32
    %c0_i32_0 = arith.constant 0 : i32
    %c0_i32_1 = arith.constant 0 : i32
    return %c0_i32, %c0_i32_0 : i32, i32
  }
  func.func @transform_5(%arg0: i32) -> (i32, i32) {
    %c0_i32 = arith.constant 0 : i32
    %c0_i32_0 = arith.constant 0 : i32
    %c0_i32_1 = arith.constant 0 : i32
    return %c0_i32, %c0_i32_0 : i32, i32
  }
  func.func @transform_6(%arg0: i32) -> (i32, i32) {
    %c0_i32 = arith.constant 0 : i32
    %c0_i32_0 = arith.constant 0 : i32
    %c0_i32_1 = arith.constant 0 : i32
    return %c0_i32, %c0_i32_0 : i32, i32
  }
  func.func @transform_7(%arg0: i32) -> (i32, i32) {
    %c0_i32 = arith.constant 0 : i32
    %c0_i32_0 = arith.constant 0 : i32
    %c0_i32_1 = arith.constant 0 : i32
    return %c0_i32, %c0_i32_0 : i32, i32
  }
  func.func @transform_8(%arg0: i32) -> (i32, i32) {
    %c0_i32 = arith.constant 0 : i32
    %c0_i32_0 = arith.constant 0 : i32
    %c0_i32_1 = arith.constant 0 : i32
    return %c0_i32, %c0_i32_0 : i32, i32
  }
  func.func @transform_9(%arg0: i32) -> (i32, i32) {
    %c0_i32 = arith.constant 0 : i32
    %c0_i32_0 = arith.constant 0 : i32
    return %arg0, %c0_i32 : i32, i32
  }
}

</mosaic_0001>

<bundles_post_ra>
// kernel: _mlp_forward_impl.1
= control target key start
LH: loop header
LB: loop body
LE: loop exit
PB: predicated region body
PF: predicated region fallthrough
CT: control target
= control target key end

     0   :  { %14 = vsyncpa [#allocation3], 0  ;;  %s1788_s0 = inlined_call_operand.hbm [shape: f32[8,64], index: 0, kind: input, shape index: {}]   ;;  %s1789_s1 = inlined_call_operand.hbm [shape: bf16[64,512], index: 1, kind: input, shape index: {}]   ;;  %s1790_s2 = inlined_call_operand.hbm [shape: f32[1,512], index: 2, kind: input, shape index: {}]   ;;  %s1791_s3 = inlined_call_operand.hbm [shape: bf16[512,256], index: 3, kind: input, shape index: {}]   ;;  %s1792_s4 = inlined_call_operand.vmem [shape: f32[1,256], index: 4, kind: input, shape index: {}]   ;;  %s1793_s5 = inlined_call_operand.hbm [shape: bf16[256,128], index: 5, kind: input, shape index: {}]   ;;  %s1794_s6 = inlined_call_operand.vmem [shape: f32[1,128], index: 6, kind: input, shape index: {}]   ;;  %s1795_s7 = inlined_call_operand.hbm [shape: bf16[128,128], index: 7, kind: input, shape index: {}]   ;;  %s1796_s8 = inlined_call_operand.vmem [shape: f32[1,128], index: 8, kind: input, shape index: {}]   ;;  %s1797_s9 = inlined_call_operand.hbm [shape: bf16[8,128], index: 9, kind: output, shape index: {}]  }
   0x1   :  { %15 = vsyncpa [#allocation6], 0 }
   0x2   :  { %16 = vsyncpa [#allocation9], 0 }
   0x3   :  { %17 = vsyncpa [#allocation12], 0 }
   0x4   :  { %18 = vsyncpa [#allocation4], 0  ;;  %s1607_s30 = smov [#allocation5]   ;;  %s1443_s13 = scalar_lea.hbm %s1789_s1, 2048 }
   0x5   :  { %s34_s10 = sshll.u32 %s1607_s30, 4  ;;  %p1444_p0 = scmp.ne.s32.totalorder %s1789_s1, %s1443_s13  ;;  %s35_s10 = int_to_ptr.vmem [resolvable:$true] %s34_s10 }
   0x6   :  { %p1447_p1 = scmp.lt.u32.totalorder %s1443_s13, %s1789_s1 }
   0x8   :  { %p1449_p2 = pnand %p1447_p1, %p1444_p0 }
   0xa   :  { %1452 = shalt.err (!%p1449_p2)
}
   0xb   :  { %s1453_s18 = scalar_lea.vmem %s35_s10, 2048  ;;  %p1458_p4 = scmp.lt.s32.totalorder %s35_s10, %s35_s10 }
   0xc   :  { %p1454_p3 = scmp.ne.s32.totalorder %s35_s10, %s1453_s18  ;;  %p1459_p5 = scmp.lt.s32.totalorder %s1453_s18, %s1453_s18 }
   0xe   :  { %p1460_p6 = por %p1459_p5, %p1458_p4 }
  0x10   :  { %p1461_p7 = pnand %p1460_p6, %p1454_p3 }
  0x12   :  { %1464 = shalt.err (!%p1461_p7)
}
  0x13   :  { %s1608_s19 = smov 256   ;;  %s1609_s20 = smov 16  }
  0x14   :  { %40 = dma.hbm_to_vmem [thread:$0]  %s1789_s1, 2048, %s35_s10, [#allocation6], %s1608_s19, %s1608_s19, %s1609_s20  }
  0x15   :  { %s1610_s23 = smov [#allocation8]   ;;  %s1465_s27 = scalar_lea.hbm %s1791_s3, 8192 }
  0x16   :  { %s56_s24 = sshll.u32 %s1610_s23, 4  ;;  %p1466_p8 = scmp.ne.s32.totalorder %s1791_s3, %s1465_s27  ;;  %s57_s24 = int_to_ptr.vmem [resolvable:$true] %s56_s24 }
  0x17   :  { %p1469_p9 = scmp.lt.u32.totalorder %s1465_s27, %s1791_s3 }
  0x19   :  { %p1471_p10 = pnand %p1469_p9, %p1466_p8 }
  0x1b   :  { %1474 = shalt.err (!%p1471_p10)
}
  0x1c   :  { %s1475_s12 = scalar_lea.vmem %s57_s24, 8192  ;;  %p1480_p12 = scmp.lt.s32.totalorder %s57_s24, %s57_s24 }
  0x1d   :  { %p1476_p11 = scmp.ne.s32.totalorder %s57_s24, %s1475_s12  ;;  %p1481_p13 = scmp.lt.s32.totalorder %s1475_s12, %s1475_s12 }
  0x1f   :  { %p1482_p0 = por %p1481_p13, %p1480_p12 }
  0x21   :  { %p1483_p1 = pnand %p1482_p0, %p1476_p11 }
  0x23   :  { %1486 = shalt.err (!%p1483_p1)
}
  0x24   :  { %s1611_s1 = smov 128   ;;  %s1612_s10 = smov 8  }
  0x25   :  { %62 = dma.hbm_to_vmem [thread:$0]  %s1791_s3, 8192, %s57_s24, [#allocation9], %s1611_s1, %s1611_s1, %s1612_s10  }
  0x26   :  { %s1613_s15 = smov [#allocation2]   ;;  %s1614_s17 = smov [#allocation7]  }
  0x27   :  { %s25_s16 = sshll.u32 %s1613_s15, 4  ;;  %s47_s18 = sshll.u32 %s1614_s17, 4  ;;  %s26_s16 = int_to_ptr.vmem [resolvable:$true] %s25_s16  ;;  %s48_s18 = int_to_ptr.vmem [resolvable:$true] %s47_s18 }
  0x28   :  { %s1487_s21 = scalar_lea.hbm %s1788_s0, 128 }
  0x29   :  { %p1488_p2 = scmp.ne.s32.totalorder %s1788_s0, %s1487_s21  ;;  %p1491_p3 = scmp.lt.u32.totalorder %s1487_s21, %s1788_s0 }
  0x2b   :  { %p1493_p4 = pnand %p1491_p3, %p1488_p2 }
  0x2d   :  { %1496 = shalt.err (!%p1493_p4)
}
  0x2e   :  { %s1497_s3 = scalar_lea.vmem %s26_s16, 128  ;;  %p1502_p6 = scmp.lt.s32.totalorder %s26_s16, %s26_s16 }
  0x2f   :  { %p1498_p5 = scmp.ne.s32.totalorder %s26_s16, %s1497_s3  ;;  %p1503_p7 = scmp.lt.s32.totalorder %s1497_s3, %s1497_s3 }
  0x31   :  { %p1504_p8 = por %p1503_p7, %p1502_p6 }
  0x33   :  { %p1505_p9 = pnand %p1504_p8, %p1498_p5 }
  0x35   :  { %1508 = shalt.err (!%p1505_p9)
}
  0x36   :  { %28 = dma.hbm_to_vmem [thread:$0]  %s1788_s0, 128, %s26_s16, [#allocation3]  }
  0x37   :  { %s1509_s30 = scalar_lea.hbm %s1790_s2, 64 }
  0x38   :  { %p1510_p10 = scmp.ne.s32.totalorder %s1790_s2, %s1509_s30  ;;  %p1513_p11 = scmp.lt.u32.totalorder %s1509_s30, %s1790_s2 }
  0x3a   :  { %p1515_p12 = pnand %p1513_p11, %p1510_p10 }
  0x3c   :  { %1518 = shalt.err (!%p1515_p12)
}
  0x3d   :  { %s1519_s13 = scalar_lea.vmem %s48_s18, 64  ;;  %p1524_p0 = scmp.lt.s32.totalorder %s48_s18, %s48_s18 }
  0x3e   :  { %p1520_p13 = scmp.ne.s32.totalorder %s48_s18, %s1519_s13  ;;  %p1525_p1 = scmp.lt.s32.totalorder %s1519_s13, %s1519_s13 }
  0x40   :  { %p1526_p2 = por %p1525_p1, %p1524_p0 }
  0x42   :  { %p1527_p3 = pnand %p1526_p2, %p1520_p13 }
  0x44   :  { %1530 = shalt.err (!%p1527_p3)
}
  0x45   :  { %50 = dma.hbm_to_vmem [thread:$0]  %s1790_s2, 64, %s48_s18, [#allocation6]  }
  0x46   :  { %s1615_s15 = smov [#allocation10]   ;;  %s1531_s20 = scalar_lea.hbm %s1793_s5, 2048 }
  0x47   :  { %s70_s16 = sshll.u32 %s1615_s15, 4  ;;  %p1532_p4 = scmp.ne.s32.totalorder %s1793_s5, %s1531_s20  ;;  %s71_s16 = int_to_ptr.vmem [resolvable:$true] %s70_s16 }
  0x48   :  { %p1535_p5 = scmp.lt.u32.totalorder %s1531_s20, %s1793_s5 }
  0x4a   :  { %p1537_p6 = pnand %p1535_p5, %p1532_p4 }
  0x4c   :  { %1540 = shalt.err (!%p1537_p6)
}
  0x4d   :  { %s1541_s26 = scalar_lea.vmem %s71_s16, 2048  ;;  %p1546_p8 = scmp.lt.s32.totalorder %s71_s16, %s71_s16 }
  0x4e   :  { %p1542_p7 = scmp.ne.s32.totalorder %s71_s16, %s1541_s26  ;;  %p1547_p9 = scmp.lt.s32.totalorder %s1541_s26, %s1541_s26 }
  0x50   :  { %p1548_p10 = por %p1547_p9, %p1546_p8 }
  0x52   :  { %p1549_p11 = pnand %p1548_p10, %p1542_p7 }
  0x54   :  { %1552 = shalt.err (!%p1549_p11)
}
  0x55   :  { %s1616_s2 = smov 64   ;;  %s1617_s18 = smov 4  }
  0x56   :  { %76 = dma.hbm_to_vmem [thread:$0]  %s1793_s5, 2048, %s71_s16, [#allocation9], %s1616_s2, %s1616_s2, %s1617_s18  }
  0x57   :  { %s1618_s27 = smov [#allocation11]   ;;  %s1553_s11 = scalar_lea.hbm %s1795_s7, 1024 }
  0x58   :  { %s84_s28 = sshll.u32 %s1618_s27, 4  ;;  %p1554_p12 = scmp.ne.s32.totalorder %s1795_s7, %s1553_s11  ;;  %s85_s28 = int_to_ptr.vmem [resolvable:$true] %s84_s28 }
  0x59   :  { %p1557_p13 = scmp.lt.u32.totalorder %s1553_s11, %s1795_s7 }
  0x5b   :  { %p1559_p0 = pnand %p1557_p13, %p1554_p12 }
  0x5d   :  { %1562 = shalt.err (!%p1559_p0)
}
  0x5e   :  { %s1563_s0 = scalar_lea.vmem %s85_s28, 1024  ;;  %p1568_p2 = scmp.lt.s32.totalorder %s85_s28, %s85_s28 }
  0x5f   :  { %p1564_p1 = scmp.ne.s32.totalorder %s85_s28, %s1563_s0  ;;  %p1569_p3 = scmp.lt.s32.totalorder %s1563_s0, %s1563_s0 }
  0x61   :  { %p1570_p4 = por %p1569_p3, %p1568_p2 }
  0x63   :  { %p1571_p5 = pnand %p1570_p4, %p1564_p1 }
  0x65   :  { %1574 = shalt.err (!%p1571_p5)
}
  0x66   :  { %90 = dma.hbm_to_vmem [thread:$0]  %s1795_s7, 1024, %s85_s28, [#allocation12], %s1616_s2, %s1616_s2, %s1617_s18  }
  0x67   :  { %1597 = dma.done.wait [#allocation3], 128  }
  0x68   :  { %1598 = vsyncadd [#allocation3], 4294967168 }
  0x69   :  { %1599 = dma.done.wait [#allocation6], 2112  }
  0x6a   :  { %1600 = vsyncadd [#allocation6], 4294965184 }
  0x6b   :  { %1601 = dma.done.wait [#allocation9], 10240  }
  0x6c   :  { %1602 = vsyncadd [#allocation9], 4294957056 }
  0x6d   :  { %1603 = dma.done.wait [#allocation12], 1024  }
  0x6e   :  { %1604 = vsyncadd [#allocation12], 4294966272  ;;  %v1619_v0 = vmov 0   ;;  %v1295_v1 = vld [vmem:[#allocation5 + $0x4] ss:$16 sps:$4 sm:$0xff]   ;;  %v112_v9 = vld [vmem:[#allocation2] sm:$0xff] }
  0x6f   :  { %268 = vmatprep.mubr.bf16.mxu1 %v1619_v0  ;;  %v1297_v2 = vld [vmem:[#allocation5] ss:$16 sps:$4 sm:$0xff]   ;;  %236 = vmatprep.subr.bf16.mxu1 %v1295_v1  ;;  %v1298_v3 = vld [vmem:[#allocation5 + $0x24] ss:$16 sps:$4 sm:$0xff]   ;;  %v1309_v10 = vld [vmem:[#allocation5 + $0xc] ss:$16 sps:$4 sm:$0xff]   ;;  %v113_v14 = vpack.c.bf16 %v112_v9, %v112_v9  ;;  %v132_v1 = vlaneseq }
  0x70   :  { %237 = vmatpush1.bf16.msra.mxu1 %v1297_v2  ;;  %v1300_v4 = vld [vmem:[#allocation5 + $0x20] ss:$16 sps:$4 sm:$0xff]   ;;  %v1301_v5 = vld [vmem:[#allocation5 + $0x44] ss:$16 sps:$4 sm:$0xff]   ;;  %v1307_v15 = vld [vmem:[#allocation5 + $0x8] ss:$16 sps:$4 sm:$0xff]  }
  0x71   :  { %238 = vmatprep.subr.bf16.mxu1 %v1298_v3  ;;  %v1303_v6 = vld [vmem:[#allocation5 + $0x40] ss:$16 sps:$4 sm:$0xff]   ;;  %v1304_v7 = vld [vmem:[#allocation5 + $0x64] ss:$16 sps:$4 sm:$0xff]   ;;  %vm232_vm0 = vcmask 523264   ;;  %v1747_v2 = vshrl.u32 %v132_v1, 7 }
  0x72   :  { %v1306_v8 = vld [vmem:[#allocation5 + $0x60] ss:$16 sps:$4 sm:$0xff]   ;;  %v1321_v12 = vld [vmem:[#allocation8] ss:$8 sps:$4 sm:$0xff]   ;;  %v1324_v16 = vld [vmem:[#allocation8 + $0x10] ss:$8 sps:$4 sm:$0xff]  }
  0x73   :  { %v1319_v11 = vld [vmem:[#allocation8 + $0x4] ss:$8 sps:$4 sm:$0xff]   ;;  %v1322_v13 = vld [vmem:[#allocation8 + $0x14] ss:$8 sps:$4 sm:$0xff]   ;;  %v1312_v17 = vld [vmem:[#allocation5 + $0x2c] ss:$16 sps:$4 sm:$0xff]  }
  0x74   :  { %239 = vmatpush1.bf16.msra.mxu1 %v1300_v4  ;;  %718 = vmatprep.subr.bf16.mxu0 %v1319_v11  ;;  %v1325_v18 = vld [vmem:[#allocation8 + $0x24] ss:$8 sps:$4 sm:$0xff]   ;;  %v1327_v20 = vld [vmem:[#allocation8 + $0x20] ss:$8 sps:$4 sm:$0xff]   ;;  %v1328_v21 = vld [vmem:[#allocation8 + $0x34] ss:$8 sps:$4 sm:$0xff]  }
  0x75   :  { %240 = vmatprep.subr.bf16.mxu1 %v1301_v5  ;;  %719 = vmatpush1.bf16.msra.mxu0 %v1321_v12  ;;  %v1310_v19 = vld [vmem:[#allocation5 + $0x28] ss:$16 sps:$4 sm:$0xff]   ;;  %v1315_v22 = vld [vmem:[#allocation5 + $0x4c] ss:$16 sps:$4 sm:$0xff]   ;;  %v134_v3 = vsub.s32 0, %v1747_v2  ;;  %v138_v5 = vsub.s32 1, %v1747_v2 }
  0x76   :  { %720 = vmatprep.subr.bf16.mxu0 %v1322_v13  ;;  %v1313_v23 = vld [vmem:[#allocation5 + $0x48] ss:$16 sps:$4 sm:$0xff]   ;;  %v1330_v24 = vld [vmem:[#allocation8 + $0x30] ss:$8 sps:$4 sm:$0xff]   ;;  %v1333_v28 = vld [vmem:[#allocation8 + $0x40] ss:$8 sps:$4 sm:$0xff]  }
  0x77   :  { %v1331_v25 = vld [vmem:[#allocation8 + $0x44] ss:$8 sps:$4 sm:$0xff]   ;;  %v1318_v26 = vld [vmem:[#allocation5 + $0x6c] ss:$16 sps:$4 sm:$0xff]   ;;  %v1334_v29 = vld [vmem:[#allocation8 + $0x54] ss:$8 sps:$4 sm:$0xff]  }
  0x78   :  { %241 = vmatpush1.bf16.msra.mxu1 %v1303_v6  ;;  %v1316_v27 = vld [vmem:[#allocation5 + $0x68] ss:$16 sps:$4 sm:$0xff]   ;;  %v1336_v30 = vld [vmem:[#allocation8 + $0x50] ss:$8 sps:$4 sm:$0xff]   ;;  %v1339_v32 = vld [vmem:[#allocation8 + $0x60] ss:$8 sps:$4 sm:$0xff]  }
  0x79   :  { %242 = vmatprep.subr.bf16.mxu1 %v1304_v7  ;;  %721 = vmatpush1.bf16.msra.mxu0 %v1324_v16  ;;  %v1337_v31 = vld [vmem:[#allocation8 + $0x64] ss:$8 sps:$4 sm:$0xff]   ;;  %v1340_v33 = vld [vmem:[#allocation8 + $0x74] ss:$8 sps:$4 sm:$0xff]   ;;  %v1342_v34 = vld [vmem:[#allocation8 + $0x70] ss:$8 sps:$4 sm:$0xff]  }
  0x7a   :  { %722 = vmatprep.subr.bf16.mxu0 %v1325_v18  ;;  %v1343_v35 = vld [vmem:[#allocation8 + $0x84] ss:$8 sps:$4 sm:$0xff]   ;;  %v1345_v36 = vld [vmem:[#allocation8 + $0x80] ss:$8 sps:$4 sm:$0xff]   ;;  %v1346_v37 = vld [vmem:[#allocation8 + $0x94] ss:$8 sps:$4 sm:$0xff]  }
  0x7b   :  { %v1348_v38 = vld [vmem:[#allocation8 + $0x90] ss:$8 sps:$4 sm:$0xff]   ;;  %v1349_v39 = vld [vmem:[#allocation8 + $0xa4] ss:$8 sps:$4 sm:$0xff]   ;;  %v1351_v40 = vld [vmem:[#allocation8 + $0xa0] ss:$8 sps:$4 sm:$0xff]  }
  0x7c   :  { %243 = vmatpush1.bf16.msra.mxu1 %v1306_v8  ;;  %v1352_v41 = vld [vmem:[#allocation8 + $0xb4] ss:$8 sps:$4 sm:$0xff]   ;;  %v1354_v42 = vld [vmem:[#allocation8 + $0xb0] ss:$8 sps:$4 sm:$0xff]   ;;  %v1355_v43 = vld [vmem:[#allocation8 + $0xc4] ss:$8 sps:$4 sm:$0xff]  }
  0x7d   :  { %277 = vmatprep.subr.bf16.mxu1 %v1309_v10  ;;  %723 = vmatpush1.bf16.msra.mxu0 %v1327_v20  ;;  %v1357_v44 = vld [vmem:[#allocation8 + $0xc0] ss:$8 sps:$4 sm:$0xff]   ;;  %v1358_v45 = vld [vmem:[#allocation8 + $0xd4] ss:$8 sps:$4 sm:$0xff]   ;;  %v1360_v46 = vld [vmem:[#allocation8 + $0xd0] ss:$8 sps:$4 sm:$0xff]  }
  0x7e   :  { %724 = vmatprep.subr.bf16.mxu0 %v1328_v21  ;;  %v1361_v47 = vld [vmem:[#allocation8 + $0xe4] ss:$8 sps:$4 sm:$0xff]   ;;  %v1363_v48 = vld [vmem:[#allocation8 + $0xe0] ss:$8 sps:$4 sm:$0xff]   ;;  %v1364_v49 = vld [vmem:[#allocation8 + $0xf4] ss:$8 sps:$4 sm:$0xff]  }
  0x7f   :  { %1130 = vmatmul.mubr.msk.bf16.vlgmr.msra.gmra.mrb[0].mxu1 %vm232_vm0, %v113_v14  ;;  %v1366_v50 = vld [vmem:[#allocation8 + $0xf0] ss:$8 sps:$4 sm:$0xff]   ;;  %v1369_v51 = vld [vmem:[#allocation8 + $0x104] ss:$8 sps:$4 sm:$0xff]   ;;  %v1750_v4 = vld [vmem:[#allocation7] sm:$0xf] }
  0x80   :  { %278 = vmatpush1.bf16.msra.mxu1 %v1307_v15  ;;  %309 = vmatprep.mubr.bf16.mxu1 %v1619_v0  ;;  %v1415_v52 = vld [vmem:[#allocation10 + $0x40] sm:$0xff]   ;;  %v1417_v54 = vld [vmem:[#allocation10 + $0x48] sm:$0xff]   ;;  %v1419_v56 = vld [vmem:[#allocation10 + $0x50] sm:$0xff]   ;;  %v135_v6 = vrot.slane %v1750_v4, %v134_v3  ;;  %v139_v7 = vrot.slane %v1750_v4, %v138_v5  ;;  %v146_v20 = vsub.s32 3, %v1747_v2  ;;  %vm1621_vm1 = vmmov 0  }
  0x81   :  { %279 = vmatprep.subr.bf16.mxu1 %v1312_v17  ;;  %725 = vmatpush1.bf16.msra.mxu0 %v1330_v24  ;;  %v1416_v53 = vld [vmem:[#allocation10] sm:$0xff]   ;;  %v1418_v55 = vld [vmem:[#allocation10 + $0x8] sm:$0xff]   ;;  %v1420_v57 = vld [vmem:[#allocation10 + $0x10] sm:$0xff]  }
  0x82   :  { %726 = vmatprep.subr.bf16.mxu0 %v1331_v25  ;;  %v1421_v58 = vld [vmem:[#allocation10 + $0x58] sm:$0xff]   ;;  %v1423_v60 = vld [vmem:[#allocation10 + $0x60] sm:$0xff]   ;;  %v1425_v62 = vld [vmem:[#allocation10 + $0x68] sm:$0xff]  }
  0x83   :  { %v1422_v59 = vld [vmem:[#allocation10 + $0x18] sm:$0xff]   ;;  %v1424_v61 = vld [vmem:[#allocation10 + $0x20] sm:$0xff]   ;;  %v1426_v63 = vld [vmem:[#allocation10 + $0x28] sm:$0xff]  }
  0x84   :  { %280 = vmatpush1.bf16.msra.mxu1 %v1310_v19  ;;  %v1427_v0 = vld [vmem:[#allocation10 + $0x70] sm:$0xff]   ;;  %v1367_v15 = vld [vmem:[#allocation8 + $0x100] ss:$8 sps:$4 sm:$0xff]   ;;  %v1375_v19 = vld [vmem:[#allocation8 + $0x124] ss:$8 sps:$4 sm:$0xff]  }
  0x85   :  { %281 = vmatprep.subr.bf16.mxu1 %v1315_v22  ;;  %727 = vmatpush1.bf16.msra.mxu0 %v1333_v28  ;;  %v1372_v17 = vld [vmem:[#allocation8 + $0x114] ss:$8 sps:$4 sm:$0xff]   ;;  %v1370_v18 = vld [vmem:[#allocation8 + $0x110] ss:$8 sps:$4 sm:$0xff]   ;;  %v1373_v21 = vld [vmem:[#allocation8 + $0x120] ss:$8 sps:$4 sm:$0xff]  }
  0x86   :  { %728 = vmatprep.subr.bf16.mxu0 %v1334_v29  ;;  %v1378_v22 = vld [vmem:[#allocation8 + $0x134] ss:$8 sps:$4 sm:$0xff]   ;;  %v1376_v24 = vld [vmem:[#allocation8 + $0x130] ss:$8 sps:$4 sm:$0xff]  }
  0x88   :  { %282 = vmatpush1.bf16.msra.mxu1 %v1313_v23  ;;  %v147_v23 = vrot.slane %v1750_v4, %v146_v20 }
  0x89   :  { %283 = vmatprep.subr.bf16.mxu1 %v1318_v26  ;;  %729 = vmatpush1.bf16.msra.mxu0 %v1336_v30  ;;  %v1381_v26 = vld [vmem:[#allocation8 + $0x144] ss:$8 sps:$4 sm:$0xff]  }
  0x8a   :  { %730 = vmatprep.subr.bf16.mxu0 %v1337_v31  ;;  %v1379_v31 = vld [vmem:[#allocation8 + $0x140] ss:$8 sps:$4 sm:$0xff]  }
  0x8c   :  { %284 = vmatpush1.bf16.msra.mxu1 %v1316_v27 }
  0x8d   :  { %731 = vmatpush1.bf16.msra.mxu0 %v1339_v32  ;;  %1222 = vmatprep.subr.bf16.mxu1 %v1415_v52  ;;  %v1411_v52 = vld [vmem:[#allocation8 + $0x1e4] ss:$8 sps:$4 sm:$0xff]  }
  0x8e   :  { %732 = vmatprep.subr.bf16.mxu0 %v1340_v33  ;;  %v1384_v33 = vld [vmem:[#allocation8 + $0x154] ss:$8 sps:$4 sm:$0xff]  }
  0x8f   :  { %1131 = vmatmul.mubr.msk.bf16.vlgmr.msra.gmra.mrb[4].mxu1 %vm232_vm0, %v113_v14 }
  0x90   :  { %1223 = vmatpush3.bf16.msra.mxu1 %v1416_v53  ;;  %v1409_v53 = vld [vmem:[#allocation8 + $0x1e0] ss:$8 sps:$4 sm:$0xff]  }
  0x91   :  { %733 = vmatpush1.bf16.msra.mxu0 %v1342_v34  ;;  %1224 = vmatprep.subr.bf16.mxu1 %v1417_v54  ;;  %v1382_v34 = vld [vmem:[#allocation8 + $0x150] ss:$8 sps:$4 sm:$0xff]  }
  0x92   :  { %734 = vmatprep.subr.bf16.mxu0 %v1343_v35  ;;  %v1387_v35 = vld [vmem:[#allocation8 + $0x164] ss:$8 sps:$4 sm:$0xff]  }
  0x94   :  { %1225 = vmatpush3.bf16.msra.mxu1 %v1418_v55  ;;  %v1414_v55 = vld [vmem:[#allocation8 + $0x1f4] ss:$8 sps:$4 sm:$0xff]  }
  0x95   :  { %735 = vmatpush1.bf16.msra.mxu0 %v1345_v36  ;;  %1226 = vmatprep.subr.bf16.mxu1 %v1419_v56  ;;  %v1385_v36 = vld [vmem:[#allocation8 + $0x160] ss:$8 sps:$4 sm:$0xff]   ;;  %v1412_v56 = vld [vmem:[#allocation8 + $0x1f0] ss:$8 sps:$4 sm:$0xff]  }
  0x96   :  { %736 = vmatprep.subr.bf16.mxu0 %v1346_v37  ;;  %v1390_v37 = vld [vmem:[#allocation8 + $0x174] ss:$8 sps:$4 sm:$0xff]  }
  0x98   :  { %1227 = vmatpush3.bf16.msra.mxu1 %v1420_v57 }
  0x99   :  { %737 = vmatpush1.bf16.msra.mxu0 %v1348_v38  ;;  %1228 = vmatprep.subr.bf16.mxu1 %v1421_v58  ;;  %v1388_v38 = vld [vmem:[#allocation8 + $0x170] ss:$8 sps:$4 sm:$0xff]  }
  0x9a   :  { %738 = vmatprep.subr.bf16.mxu0 %v1349_v39  ;;  %v1393_v39 = vld [vmem:[#allocation8 + $0x184] ss:$8 sps:$4 sm:$0xff]  }
  0x9c   :  { %1229 = vmatpush3.bf16.msra.mxu1 %v1422_v59  ;;  %v1428_v59 = vld [vmem:[#allocation10 + $0x30] sm:$0xff]  }
  0x9d   :  { %739 = vmatpush1.bf16.msra.mxu0 %v1351_v40  ;;  %1230 = vmatprep.subr.bf16.mxu1 %v1423_v60  ;;  %v1391_v40 = vld [vmem:[#allocation8 + $0x180] ss:$8 sps:$4 sm:$0xff]   ;;  %v1429_v60 = vld [vmem:[#allocation10 + $0x78] sm:$0xff]  }
  0x9e   :  { %740 = vmatprep.subr.bf16.mxu0 %v1352_v41  ;;  %v1396_v41 = vld [vmem:[#allocation8 + $0x194] ss:$8 sps:$4 sm:$0xff]  }
  0xa0   :  { %1231 = vmatpush3.bf16.msra.mxu1 %v1424_v61  ;;  %v1430_v61 = vld [vmem:[#allocation10 + $0x38] sm:$0xff]  }
  0xa1   :  { %741 = vmatpush1.bf16.msra.mxu0 %v1354_v42  ;;  %1232 = vmatprep.subr.bf16.mxu1 %v1425_v62  ;;  %v1394_v42 = vld [vmem:[#allocation8 + $0x190] ss:$8 sps:$4 sm:$0xff]   ;;  %v1620_v62 = vmov 0.0  }
  0xa2   :  { %742 = vmatprep.subr.bf16.mxu0 %v1355_v43  ;;  %v1399_v43 = vld [vmem:[#allocation8 + $0x1a4] ss:$8 sps:$4 sm:$0xff]  }
  0xa4   :  { %1233 = vmatpush3.bf16.msra.mxu1 %v1426_v63  ;;  %v386_v63 = vld [vmem:[%s1792_s4] sm:$0x3] }
  0xa5   :  { %743 = vmatpush1.bf16.msra.mxu0 %v1357_v44  ;;  %1234 = vmatprep.subr.bf16.mxu1 %v1427_v0  ;;  %v1397_v44 = vld [vmem:[#allocation8 + $0x1a0] ss:$8 sps:$4 sm:$0xff]   ;;  %v391_v0 = vrot.slane %v386_v63, %v134_v3  ;;  %v395_v1 = vrot.slane %v386_v63, %v138_v5 }
  0xa6   :  { %744 = vmatprep.subr.bf16.mxu0 %v1358_v45  ;;  %v1402_v45 = vld [vmem:[#allocation8 + $0x1b4] ss:$8 sps:$4 sm:$0xff]   ;;  %v1435_v3 = vld [vmem:[#allocation11 + $0x20] sm:$0xff]   ;;  %v1436_v5 = vld [vmem:[#allocation11 + $0x28] sm:$0xff]  }
  0xa8   :  { %1235 = vmatpush3.bf16.msra.mxu1 %v1428_v59 }
  0xa9   :  { %745 = vmatpush1.bf16.msra.mxu0 %v1360_v46  ;;  %v1400_v46 = vld [vmem:[#allocation8 + $0x1b0] ss:$8 sps:$4 sm:$0xff]   ;;  %1236 = vmatprep.subr.bf16.mxu1 %v1429_v60 }
  0xaa   :  { %746 = vmatprep.subr.bf16.mxu0 %v1361_v47  ;;  %v1405_v47 = vld [vmem:[#allocation8 + $0x1c4] ss:$8 sps:$4 sm:$0xff]  }
  0xac   :  { %1237 = vmatpush3.bf16.msra.mxu1 %v1430_v61 }
  0xad   :  { %747 = vmatpush1.bf16.msra.mxu0 %v1363_v48  ;;  %v1403_v48 = vld [vmem:[#allocation8 + $0x1c0] ss:$8 sps:$4 sm:$0xff]   ;;  %1253 = vmatprep.subr.bf16.mxu1 %v1620_v62 }
  0xae   :  { %748 = vmatprep.subr.bf16.mxu0 %v1364_v49  ;;  %v1408_v49 = vld [vmem:[#allocation8 + $0x1d4] ss:$8 sps:$4 sm:$0xff]  }
  0xb1   :  { %749 = vmatpush1.bf16.msra.mxu0 %v1366_v50  ;;  %v1406_v50 = vld [vmem:[#allocation8 + $0x1d0] ss:$8 sps:$4 sm:$0xff]  }
  0xb2   :  { %759 = vmatprep.subr.bf16.mxu0 %v1369_v51  ;;  %v142_v51 = vsub.s32 2, %v1747_v2  ;;  %v1434_v2 = vld [vmem:[#allocation11 + $0x18] sm:$0xff]  }
  0xb4   :  { %v143_v54 = vrot.slane %v1750_v4, %v142_v51 }
 0x152   :  { %v270_v8 = vpop.f32.mrb[0].mxu1 }
 0x153   :  { %v271_v9 = vadd.f32 %v270_v8, %v135_v6  ;;  %v272_v10 = vpop.f32.mrb[1].mxu1 }
 0x154   :  { %v274_v11 = vpop.f32.mrb[2].mxu1  ;;  %v273_v12 = vadd.f32 %v272_v10, %v139_v7 }
 0x155   :  { %v275_v13 = vpop.f32.mrb[3].mxu1  ;;  %v318_v16 = vpack.c.bf16 %v271_v9, %v271_v9 }
 0x156   :  { %v319_v14 = vpack.c.bf16 %v273_v12, %v273_v12  ;;  %v1431_v12 = vld [vmem:[#allocation11] sm:$0xff]  }
 0x158   :  { %750 = vmatprep.mubr.bf16.mxu0 %v319_v14  ;;  %v1432_v14 = vld [vmem:[#allocation11 + $0x8] sm:$0xff]  }
 0x159   :  { %751 = vmatmul.mubr.bf16.vlgmr.msra.gmra.mrb[0].mxu0 %v318_v16  ;;  %v1437_v16 = vld [vmem:[#allocation11 + $0x30] sm:$0xff]  }
 0x15a   :  { %760 = vmatpush1.bf16.msra.mxu0 %v1367_v15  ;;  %v1433_v15 = vld [vmem:[#allocation11 + $0x10] sm:$0xff]  }
 0x15b   :  { %761 = vmatprep.subr.bf16.mxu0 %v1372_v17  ;;  %v1438_v17 = vld [vmem:[#allocation11 + $0x38] sm:$0xff]  }
 0x15e   :  { %762 = vmatpush1.bf16.msra.mxu0 %v1370_v18 }
 0x15f   :  { %763 = vmatprep.subr.bf16.mxu0 %v1375_v19  ;;  %v1196_v19 = vld [vmem:[%s1794_s6] ss:$0 sm:$0xff]  ;;  %s1622_s6 = smov [#allocation13]  }
 0x160   :  { %s1102_s20 = sshll.u32 %s1622_s6, 4  ;;  %s1103_s20 = int_to_ptr.vmem [resolvable:$true] %s1102_s20 }
 0x161   :  { %s1575_s21 = scalar_lea.vmem %s1103_s20, 64  ;;  %p1580_p7 = scmp.lt.s32.totalorder %s1103_s20, %s1103_s20 }
 0x162   :  { %764 = vmatpush1.bf16.msra.mxu0 %v1373_v21  ;;  %v311_v25 = vpop.f32.mrb[4].mxu1  ;;  %p1576_p6 = scmp.ne.s32.totalorder %s1103_s20, %s1575_s21  ;;  %p1581_p8 = scmp.lt.s32.totalorder %s1575_s21, %s1575_s21 }
 0x163   :  { %765 = vmatprep.subr.bf16.mxu0 %v1378_v22  ;;  %v313_v27 = vpop.f32.mrb[5].mxu1  ;;  %v312_v57 = vadd.f32 %v311_v25, %v143_v54 }
 0x164   :  { %v314_v28 = vadd.f32 %v313_v27, %v147_v23  ;;  %v315_v29 = vpop.f32.mrb[6].mxu1  ;;  %p1582_p9 = por %p1581_p8, %p1580_p7 }
 0x165   :  { %v316_v30 = vpop.f32.mrb[7].mxu1  ;;  %v320_v58 = vpack.c.bf16 %v312_v57, %v312_v57 }
 0x166   :  { %766 = vmatpush1.bf16.msra.mxu0 %v1376_v24  ;;  %v321_v32 = vpack.c.bf16 %v314_v28, %v314_v28  ;;  %p1583_p10 = pnand %p1582_p9, %p1576_p6 }
 0x167   :  { %767 = vmatprep.subr.bf16.mxu0 %v1381_v26  ;;  %v1213_v26 = vld [vmem:[%s1796_s8] ss:$0 sm:$0xff] }
 0x168   :  { %791 = vmatprep.mubr.bf16.mxu0 %v321_v32 }
 0x16a   :  { %768 = vmatpush1.bf16.msra.mxu0 %v1379_v31 }
 0x16b   :  { %769 = vmatprep.subr.bf16.mxu0 %v1384_v33 }
 0x16e   :  { %770 = vmatpush1.bf16.msra.mxu0 %v1382_v34 }
 0x16f   :  { %771 = vmatprep.subr.bf16.mxu0 %v1387_v35 }
 0x172   :  { %772 = vmatpush1.bf16.msra.mxu0 %v1385_v36 }
 0x173   :  { %773 = vmatprep.subr.bf16.mxu0 %v1390_v37 }
 0x176   :  { %774 = vmatpush1.bf16.msra.mxu0 %v1388_v38 }
 0x177   :  { %775 = vmatprep.subr.bf16.mxu0 %v1393_v39 }
 0x17a   :  { %776 = vmatpush1.bf16.msra.mxu0 %v1391_v40 }
 0x17b   :  { %777 = vmatprep.subr.bf16.mxu0 %v1396_v41 }
 0x17e   :  { %778 = vmatpush1.bf16.msra.mxu0 %v1394_v42 }
 0x17f   :  { %779 = vmatprep.subr.bf16.mxu0 %v1399_v43 }
 0x182   :  { %780 = vmatpush1.bf16.msra.mxu0 %v1397_v44 }
 0x183   :  { %781 = vmatprep.subr.bf16.mxu0 %v1402_v45 }
 0x186   :  { %782 = vmatpush1.bf16.msra.mxu0 %v1400_v46 }
 0x187   :  { %783 = vmatprep.subr.bf16.mxu0 %v1405_v47 }
 0x18a   :  { %784 = vmatpush1.bf16.msra.mxu0 %v1403_v48 }
 0x18b   :  { %785 = vmatprep.subr.bf16.mxu0 %v1408_v49 }
 0x18e   :  { %786 = vmatpush1.bf16.msra.mxu0 %v1406_v50 }
 0x18f   :  { %787 = vmatprep.subr.bf16.mxu0 %v1411_v52 }
 0x192   :  { %788 = vmatpush1.bf16.msra.mxu0 %v1409_v53 }
 0x193   :  { %789 = vmatprep.subr.bf16.mxu0 %v1414_v55 }
 0x196   :  { %790 = vmatpush1.bf16.msra.mxu0 %v1412_v56 }
 0x199   :  { %792 = vmatmul.mubr.bf16.vlgmr.msra.gmra.mrb[0].mxu0 %v320_v58 }
 0x26c   :  { %v793_v4 = vpop.f32.mrb[0].mxu0 }
 0x26d   :  { %v1273_v6 = vadd.f32 %v793_v4, %v391_v0  ;;  %v795_v7 = vpop.f32.mrb[1].mxu0 }
 0x26e   :  { %v1274_v8 = vadd.f32 %v795_v7, %v395_v1  ;;  %v797_v9 = vpop.f32.mrb[2].mxu0 }
 0x26f   :  { %v798_v10 = vpop.f32.mrb[3].mxu0  ;;  %v800_v13 = vpack.c.bf16 %v1273_v6, %v1273_v6 }
 0x270   :  { %v801_v11 = vpack.c.bf16 %v1274_v8, %v1274_v8 }
 0x272   :  { %969 = vmatprep.mubr.bf16.mxu1 %v801_v11 }
 0x273   :  { %970 = vmatmul.mubr.bf16.vlgmr.msra.gmra.mrb[8].mxu1 %v800_v13 }
 0x274   :  { %1254 = vmatpush3.bf16.msra.mxu1 %v1431_v12  ;;  %1269 = vmatprep.mubr.msk.bf16.mxu1 %vm1621_vm1, %v1620_v62 }
 0x275   :  { %1255 = vmatprep.subr.bf16.mxu1 %v1620_v62 }
 0x278   :  { %1256 = vmatpush3.bf16.msra.mxu1 %v1432_v14 }
 0x279   :  { %1257 = vmatprep.subr.bf16.mxu1 %v1620_v62 }
 0x27c   :  { %1258 = vmatpush3.bf16.msra.mxu1 %v1433_v15 }
 0x27d   :  { %1259 = vmatprep.subr.bf16.mxu1 %v1620_v62 }
 0x280   :  { %1260 = vmatpush3.bf16.msra.mxu1 %v1434_v2 }
 0x281   :  { %1261 = vmatprep.subr.bf16.mxu1 %v1620_v62 }
 0x284   :  { %1262 = vmatpush3.bf16.msra.mxu1 %v1435_v3 }
 0x285   :  { %1263 = vmatprep.subr.bf16.mxu1 %v1620_v62 }
 0x288   :  { %1264 = vmatpush3.bf16.msra.mxu1 %v1436_v5 }
 0x289   :  { %1265 = vmatprep.subr.bf16.mxu1 %v1620_v62 }
 0x28c   :  { %1266 = vmatpush3.bf16.msra.mxu1 %v1437_v16 }
 0x28d   :  { %1267 = vmatprep.subr.bf16.mxu1 %v1620_v62 }
 0x290   :  { %1268 = vmatpush3.bf16.msra.mxu1 %v1438_v17 }
 0x346   :  { %v1238_v18 = vpop.f32.mrb[8].mxu1 }
 0x347   :  { %v1239_v20 = vpop.f32.mrb[9].mxu1 }
 0x348   :  { %v1240_v21 = vadd.f32 %v1239_v20, %v1238_v18  ;;  %v1241_v22 = vpop.f32.mrb[10].mxu1 }
 0x349   :  { %v1242_v23 = vpop.f32.mrb[11].mxu1 }
 0x34a   :  { %v972_v24 = vadd.f32 %v1240_v21, %v1196_v19 }
 0x34c   :  { %v977_v25 = vpack.c.bf16 %v972_v24, %v972_v24 }
 0x34e   :  { %1270 = vmatmul.mubr.bf16.vlgmr.msra.gmra.mrb[12].mxu1 %v977_v25 }
 0x421   :  { %v1083_v27 = vpop.f32.mrb[12].mxu1 }
 0x422   :  { %v1084_v28 = vadd.f32 %v1213_v26, %v1083_v27  ;;  %v1271_v29 = vpop.f32.mrb[13].mxu1 }
 0x423   :  { %v1086_v30 = vpop.f32.mrb[14].mxu1 }
 0x424   :  { %v1089_v31 = vsub.f32 0.0, %v1084_v28  ;;  %v1272_v32 = vpop.f32.mrb[15].mxu1 }
 0x426   :  { %v1090_v33 = vmul.f32 1.442695, %v1089_v31 }
 0x428   :  { %1439 = vpow2.f32 %v1090_v33 }
 0x432   :  { %v1440_v34 = vpop.eup %1439 }
 0x433   :  { %v1092_v35 = vadd.f32 1.0, %v1440_v34 }
 0x435   :  { %1441 = vrcp.f32 %v1092_v35 }
 0x43f   :  { %v1442_v36 = vpop.eup %1441 }
 0x440   :  { %v1094_v37 = vpack.c.bf16 %v1442_v36, %v1442_v36 }
 0x442   :  { %1095 = vst [vmem:[#allocation13] sm:$0xf] %v1094_v37 }
 0x443   :  { %1586 = shalt.err (!%p1583_p10)
}
 0x444   :  { %s1587_s23 = scalar_lea.hbm %s1797_s9, 64 }
 0x445   :  { %p1588_p11 = scmp.ne.s32.totalorder %s1797_s9, %s1587_s23  ;;  %p1591_p12 = scmp.lt.u32.totalorder %s1587_s23, %s1797_s9 }
 0x447   :  { %p1593_p13 = pnand %p1591_p12, %p1588_p11 }
 0x449   :  { %1596 = shalt.err (!%p1593_p13)
}
 0x44a   :  { %1105 = dma.vmem_to_hbm [thread:$0]  %s1103_s20, 64, %s1797_s9, [#allocation4]  }
 0x44b   :  { %1605 = dma.done.wait [#allocation4], 64  }
 0x44c   :  { %1606 = vsyncadd [#allocation4], 4294967232 }
 0x44d   :  { %1109 = vsyncpa [#allocation3], 1 }
 0x44e   :  { %1110 = vsyncpa [#allocation6], 1 }
 0x44f   :  { %1111 = vsyncpa [#allocation9], 1 }
 0x450   :  { %1112 = vsyncpa [#allocation12], 1 }
 0x451   :  { %1113 = vsyncpa [#allocation4], 1 }

</bundles_post_ra>
